<compile_context>
chip_gen: v6e
topology: v6e:2x2x1
jax: 0.10.0
libtpu: 0.0.40
codegen_flags: <defaults>
</compile_context>

<pallas_src>
import functools

import numpy as np
import jax
import jax.numpy as jnp
from jax.experimental import pallas as pl
from jax.experimental.pallas import tpu as pltpu


# --------------------------------------------------------------------------- #
# Kernel
# --------------------------------------------------------------------------- #
def _geometric_mask_kernel(*refs, dim_masked, type_corrupt):
    if type_corrupt == "zero":
        keep_ref, x_ref, xm_ref = refs
    elif type_corrupt == "value":
        keep_ref, addend_ref, x_ref, xm_ref = refs
    elif type_corrupt == "noise":
        maskf_ref, x_ref, noise_ref, xm_ref = refs
    else:
        raise ValueError(f"unknown type_corrupt: {type_corrupt}")

    # All channels pass straight through; only the masked channel is fixed up.
    xm_ref[...] = x_ref[...]

    row = x_ref[:, dim_masked, :]                     # (bb, L) static sublane slice
    if type_corrupt == "zero":
        new_row = row * keep_ref[...]                 # keep: (1, L), 1 keep / 0 corrupt
    elif type_corrupt == "value":
        new_row = row * keep_ref[...] + addend_ref[...]
    else:  # noise
        new_row = row + noise_ref[:, 0, :] * maskf_ref[...]
    xm_ref[:, dim_masked, :] = new_row.astype(xm_ref.dtype)


# --------------------------------------------------------------------------- #
# Sizing helpers (generation-aware)
# --------------------------------------------------------------------------- #
def _vmem_limit_bytes():
    """Scoped VMEM limit to request: half of physical VMEM, capped at 64 MiB."""
    cap = None
    try:
        cap = int(getattr(pltpu.get_tpu_info(), "vmem_capacity_bytes", 0)) or None
    except Exception:
        cap = None
    if cap is None:
        cap = 64 << 20          # conservative: v7x physical VMEM per TensorCore
    return min(cap // 2, 64 << 20)


def _plane_bytes(c, l, dtype):
    """VMEM bytes of one (c, l) slab after (sublane, 128)-tile padding."""
    isz = jnp.dtype(dtype).itemsize
    sub = 8 * max(1, 4 // isz)                        # f32:8, bf16:16, i8:32
    c_pad = -(-c // sub) * sub
    l_pad = -(-l // 128) * 128
    return c_pad * l_pad * isz


def _pick_batch_block(batch, stream_bytes_per_batch, vmem_limit_bytes,
                      target_stream_bytes=3 << 20):
    """Batch block: ~3 MiB per stream, double-buffered footprint within VMEM budget,
    and at least 2 grid steps when batch >= 2 (so v7x shards across both cores)."""
    main = max(stream_bytes_per_batch)
    total = sum(stream_bytes_per_batch)
    bb_target = max(1, target_stream_bytes // main)
    bb_vmem = max(1, (vmem_limit_bytes // 2) // (2 * total))   # 2x = double buffering
    bb = min(int(bb_target), int(bb_vmem), int(batch))
    if batch >= 2:
        bb = min(bb, -(-batch // 2))                  # ceil(batch / 2)
    return max(1, bb)


# --------------------------------------------------------------------------- #
# Host-side geometric chain (vectorized run-length construction)
# --------------------------------------------------------------------------- #
def geometric_submask(length, mean_length=3, masking_ratio=0.15, rng=None):
    """Geometric Markov-chain submask (True = keep, False = masked).

    Distribution-identical to the original per-step loop: alternating run lengths
    are Geometric(p[state]) with support >= 1 (numpy Generator.geometric)."""
    if rng is None:
        rng = np.random.default_rng()
    p_m = 1.0 / mean_length
    p_u = p_m * masking_ratio / (1.0 - masking_ratio)
    p = np.array([p_m, p_u], dtype=np.float64)
    state = int(rng.random() > masking_ratio)         # 1 = keep, 0 = masked

    run_states, run_lens, total = [], [], 0
    while total < length:
        n = int(np.ceil((length - total) * max(p_m, p_u))) + 8
        states = (state + np.arange(n)) % 2
        lens = rng.geometric(p[states])
        run_states.append(states)
        run_lens.append(lens)
        total += int(lens.sum())
        state = int(1 - states[-1])
    states = np.concatenate(run_states)
    lens = np.concatenate(run_lens)
    return np.repeat(states.astype(bool), lens)[:length]


# --------------------------------------------------------------------------- #
# Wrapper
# --------------------------------------------------------------------------- #
def geometric_mask(x, submask, *, dim_masked=0, type_corrupt="zero",
                   value=-10.0, noise=None):
    """Pallas implementation of GeometricMask.forward's masking step.

    Returns (mask: bool[B,C,L], x_masked: x.dtype[B,C,L])."""
    assert x.ndim == 3, "expected (batch, channels, length)"
    B, C, L = x.shape
    dim_masked = int(dim_masked)
    if not (0 <= dim_masked < C):
        raise ValueError(f"dim_masked={dim_masked} out of range for {C} channels")
    if type_corrupt not in ("zero", "value", "noise"):
        raise ValueError(f"unknown type_corrupt: {type_corrupt}")

    submask = jnp.asarray(submask).reshape(L).astype(jnp.bool_)

    # --- mask: batch-invariant, built once at (C, L), broadcast lazily ---------
    chain_masked = jnp.logical_not(submask)                           # True = corrupt
    mask_cl = jnp.zeros((C, L), jnp.bool_).at[dim_masked, :].set(chain_masked)
    mask = jnp.broadcast_to(mask_cl[None], (B, C, L))

    # --- tiny (1, L) per-length rows used inside the kernel --------------------
    keep_f32 = submask.astype(jnp.float32).reshape(1, L)
    keep_row = keep_f32.astype(x.dtype)                               # 1 keep / 0 corrupt

    row_spec = pl.BlockSpec((1, L), lambda b: (0, 0))
    stream_bytes = [_plane_bytes(C, L, x.dtype), _plane_bytes(C, L, x.dtype)]

    small_specs, small_args = [], []
    noise_dm = None
    if type_corrupt == "zero":
        small_specs, small_args = [row_spec], [keep_row]
    elif type_corrupt == "value":
        addend_row = (float(value) * (1.0 - keep_f32)).astype(x.dtype)
        small_specs, small_args = [row_spec, row_spec], [keep_row, addend_row]
    else:  # noise
        if noise is None:
            raise ValueError("noise array required for type_corrupt='noise'")
        # Only the masked channel's noise is ever used -> ship (B, 1, L).
        if noise.shape == (B, C, L):
            noise_dm = noise[:, dim_masked, :]
        elif noise.shape == (B, 1, L):
            noise_dm = noise[:, 0, :]
        elif noise.shape == (B, L):
            noise_dm = noise
        else:
            raise ValueError(f"unexpected noise shape {noise.shape}")
        noise_dm = noise_dm.reshape(B, 1, L)
        maskf_row = (1.0 - keep_f32).astype(noise_dm.dtype)
        small_specs, small_args = [row_spec], [maskf_row]
        stream_bytes.append(_plane_bytes(1, L, noise_dm.dtype))

    vmem_limit = _vmem_limit_bytes()
    bb = _pick_batch_block(B, stream_bytes, vmem_limit)
    grid = (pl.cdiv(B, bb),)
    big_spec = pl.BlockSpec((bb, C, L), lambda b: (b, 0, 0))

    in_specs = list(small_specs) + [big_spec]
    args = list(small_args) + [x]
    if type_corrupt == "noise":
        in_specs.append(pl.BlockSpec((bb, 1, L), lambda b: (b, 0, 0)))
        args.append(noise_dm)

    kernel = functools.partial(_geometric_mask_kernel,
                               dim_masked=dim_masked, type_corrupt=type_corrupt)

    x_masked = pl.pallas_call(
        kernel,
        out_shape=jax.ShapeDtypeStruct((B, C, L), x.dtype),
        grid_spec=pltpu.PrefetchScalarGridSpec(
            num_scalar_prefetch=0,
            grid=grid,
            in_specs=in_specs,
            out_specs=big_spec,
        ),
        compiler_params=pltpu.CompilerParams(
            dimension_semantics=("parallel",),      # elementwise: shard batch on v7x
            vmem_limit_bytes=vmem_limit,
        ),
    )(*args)

    return mask, x_masked


# --------------------------------------------------------------------------- #
# Demo / self-test
# --------------------------------------------------------------------------- #
if __name__ == "__main__":
    key = jax.random.PRNGKey(0)
    k_x, k_noise = jax.random.split(key, 2)

    # layout implied by the module: (batch, channels, length)
    B, C, L = 2, 4, 128
    mean_length, masking_ratio, dim_masked, value = 3, 0.15, 0, -10.0

    x = jax.random.normal(k_x, (B, C, L), dtype=jnp.float32)
    noise = jax.random.normal(k_noise, (B, C, L), dtype=jnp.float32)

    # Host-side geometric chain (deterministic via a fixed numpy Generator).
    submask_np = geometric_submask(L, mean_length, masking_ratio,
                                   rng=np.random.default_rng(0))
    submask = jnp.asarray(submask_np)

    def reference(type_corrupt):
        m = jnp.ones((B, C, L), dtype=bool).at[:, dim_masked, :].set(submask)
        m = ~m
        if type_corrupt == "zero":
            xm = x * (~m)
        elif type_corrupt == "value":
            xm = x * (~m) + value * m
        else:
            xm = x + noise * m
        return m, xm

    for tc in ("zero", "value", "noise"):
        mask_out, xm_out = geometric_mask(
            x, submask,
            dim_masked=dim_masked, type_corrupt=tc, value=value,
            noise=noise if tc == "noise" else None,
        )
        mask_out, xm_out = jax.block_until_ready((mask_out, xm_out))
        m_ref, xm_ref = reference(tc)
        assert bool(jnp.array_equal(mask_out, m_ref)), f"mask mismatch for {tc}"
        assert bool(jnp.allclose(xm_out, xm_ref, rtol=1e-6, atol=1e-6)), \
            f"x_masked mismatch for {tc}"

    print("KERNEL_OK")
</pallas_src>

<mosaic_0001>
module attributes {stable_mosaic.version = 11 : i64} {
  func.func @_geometric_mask_kernel(%arg0: i32, %arg1: memref<1x128xf32, #tpu.memory_space<vmem>>, %arg2: memref<1x4x128xf32, #tpu.memory_space<vmem>>, %arg3: memref<1x4x128xf32, #tpu.memory_space<vmem>>) attributes {dimension_semantics = [#tpu.dimension_semantics<parallel>], iteration_bounds = array<i64: 2>, scalar_prefetch = 0 : i64, scratch_operands = 0 : i64, tpu.core_type = #tpu.core_type<tc>, window_params = [{pipeline_mode = #tpu.pipeline_mode<synchronous>, transform_indices = @transform_0, window_bounds = array<i64: 1, 128>}, {transform_indices = @transform_1, window_bounds = array<i64: 1, 4, 128>}, {transform_indices = @transform_2, window_bounds = array<i64: 1, 4, 128>}]} {
    %c0 = arith.constant 0 : index
    %c0_0 = arith.constant 0 : index
    %c0_1 = arith.constant 0 : index
    %0 = vector.load %arg2[%c0, %c0_0, %c0_1] : memref<1x4x128xf32, #tpu.memory_space<vmem>>, vector<1x4x128xf32>
    %c0_2 = arith.constant 0 : index
    %c0_3 = arith.constant 0 : index
    %c0_4 = arith.constant 0 : index
    %1 = vector.load %arg3[%c0_2, %c0_3, %c0_4] : memref<1x4x128xf32, #tpu.memory_space<vmem>>, vector<1x4x128xf32>
    tpu.vector_store %arg3[%c0_2, %c0_3, %c0_4], %0 {strides = array<i32>} : memref<1x4x128xf32, #tpu.memory_space<vmem>>, vector<1x4x128xf32>,
    %c0_5 = arith.constant 0 : index
    %c0_6 = arith.constant 0 : index
    %c0_7 = arith.constant 0 : index
    %2 = vector.load %arg2[%c0_5, %c0_6, %c0_7] : memref<1x4x128xf32, #tpu.memory_space<vmem>>, vector<1x1x128xf32>
    %3 = vector.shape_cast %2 : vector<1x1x128xf32> to vector<1x128xf32>
    %c0_8 = arith.constant 0 : index
    %c0_9 = arith.constant 0 : index
    %4 = vector.load %arg1[%c0_8, %c0_9] : memref<1x128xf32, #tpu.memory_space<vmem>>, vector<1x128xf32>
    %5 = arith.mulf %3, %4 : vector<1x128xf32>
    %c0_10 = arith.constant 0 : index
    %c0_11 = arith.constant 0 : index
    %c0_12 = arith.constant 0 : index
    %6 = vector.load %arg3[%c0_10, %c0_11, %c0_12] : memref<1x4x128xf32, #tpu.memory_space<vmem>>, vector<1x1x128xf32>
    %7 = vector.shape_cast %6 : vector<1x1x128xf32> to vector<1x128xf32>
    %8 = vector.shape_cast %5 : vector<1x128xf32> to vector<1x1x128xf32>
    tpu.vector_store %arg3[%c0_10, %c0_11, %c0_12], %8 {strides = array<i32>} : memref<1x4x128xf32, #tpu.memory_space<vmem>>, vector<1x1x128xf32>,
    return
  }
  func.func @transform_0(%arg0: i32) -> (i32, i32) {
    %c0_i32 = arith.constant 0 : i32
    %c0_i32_0 = arith.constant 0 : i32
    %c0_i32_1 = arith.constant 0 : i32
    return %c0_i32, %c0_i32_0 : i32, i32
  }
  func.func @transform_1(%arg0: i32) -> (i32, i32, i32) {
    %c0_i32 = arith.constant 0 : i32
    %c0_i32_0 = arith.constant 0 : i32
    %c0_i32_1 = arith.constant 0 : i32
    return %arg0, %c0_i32, %c0_i32_0 : i32, i32, i32
  }
  func.func @transform_2(%arg0: i32) -> (i32, i32, i32) {
    %c0_i32 = arith.constant 0 : i32
    %c0_i32_0 = arith.constant 0 : i32
    %c0_i32_1 = arith.constant 0 : i32
    return %arg0, %c0_i32, %c0_i32_0 : i32, i32, i32
  }
}

</mosaic_0001>

<bundles_post_ra>
// kernel: tpu_custom_call.1
= control target key start
LH: loop header
LB: loop body
LE: loop exit
PB: predicated region body
PF: predicated region fallthrough
CT: control target
= control target key end

     0   :  { %7 = vsyncpa [#allocation3], 0  ;;  %s659_s0 = inlined_call_operand.hbm [shape: f32[1,128], index: 0, kind: input, shape index: {}]   ;;  %s660_s1 = inlined_call_operand.hbm [shape: f32[2,4,128], index: 1, kind: input, shape index: {}]   ;;  %s661_s2 = inlined_call_operand.hbm [shape: f32[2,4,128], index: 2, kind: output, shape index: {}]  }
   0x1   :  { %8 = vsyncpa [#allocation6], 0 }
   0x2   :  { %10 = vsyncpa [#allocation6 + $0x1], 0 }
   0x3   :  { %11 = vsyncpa [#allocation4], 0 }
   0x4   :  { %13 = vsyncpa [#allocation4 + $0x1], 0  ;;  %s487_s9 = smov 0   ;;  %s489_s10 = smov 0  }
   0x5   :  { %s491_s11 = smov 0   ;;  %s493_s12 = smov 0  }
   0x6 LB: > { %s508_s13 = sadd.s32 4294967295, %s467_s12   ;;  %s274_s14 = sadd.s32 4294967294, %s467_s12   ;;  %s467_s12 = sphi %s493_s12, %s684_s12   ;;  %s463_s11 = sphi %s491_s11, %s683_s11   ;;  %s459_s10 = sphi %s489_s10, %s682_s10   ;;  %s455_s9 = sphi %s487_s9, %s681_s9  }
   0x7   : > { %p60_p0 = scmp.ne.s32.totalorder %s459_s10, %s455_s9  ;;  %p662_p1 = scmp.eq.s32.totalorder %s508_s13, 0 }
   0x8   : > { %p90_p3 = scmp.eq.s32.totalorder %s274_s14, 1  ;;  %p275_p5 = scmp.ge.s32.totalorder %s467_s12, 1 }
   0x9   : > { %p517_p4 = por %p662_p1, %p60_p0  ;;  %p97_p7 = scmp.lt.s32.totalorder %s467_s12, 3 }
   0xa   : > { %p522_p6 = por %p90_p3, %p60_p0  ;;  %s469_s18 = smov [#allocation2]  }
   0xb   : > { %s666_s15 = scalar_select %p517_p4, 1, 0 }
   0xc   : > { %s667_s16 = scalar_select %p522_p6, 1, 0 }
   0xd   : > { %p527_p8 = pnand %p275_p5, %p97_p7  ;;  %s110_s19 = sshll.u32 %s469_s18, 4  ;;  %s111_s19 = int_to_ptr.vmem [resolvable:$true] %s110_s19 }
   0xe   : > { %s535_s20 = sadd.s32 1, %s467_s12   ;;  %s47_s24 = sadd.s32 1, %s463_s11 }
   0xf   : > { %s668_s17 = scalar_select %p527_p8, 1, 0 }
  0x10   : > { %p296_p10 = pneg %p527_p8  ;;  %s44_s22 = ssub.s32 %s467_s12, %s535_s20 }
  0x11   : > { %p545_p12 = scmp.eq.s32.totalorder %s44_s22, 0  ;;  %p54_p13 = scmp.ne.s32.totalorder %s463_s11, %s459_s10 }
  0x12   : > { %p539_p11 = pnand %p296_p10, %p662_p1  ;;  %s356_s25 = scalar_lea.vmem %s111_s19, 16 }
  0x13   : > { %p357_p3 = scmp.ne.s32.totalorder %s111_s19, %s356_s25  ;;  %s363_s26 = scalar_lea.vmem %s111_s19, 32 }
  0x14   : > { %p347_p0 = pneg %p539_p11  ;;  %p364_p9 = scmp.lt.s32.totalorder %s111_s19, %s111_s19 }
  0x15   : > { %p365_p10 = scmp.lt.s32.totalorder %s363_s26, %s356_s25 }
  0x16   : > { %p359_p5 = pnand %p357_p3, %p347_p0 }
  0x17   : > { %p366_p1 = por %p365_p10, %p364_p9 }
  0x18   : > { %p360_p7 = pneg %p359_p5 }
  0x1a   : > { %p367_p2 = pnand %p366_p1, %p360_p7 }
  0x1c   : > { %370 = shalt.err (!%p367_p2)
}
  0x1d   : > { %299 = dma.hbm_to_vmem [thread:$0]  (!%p539_p11), %s659_s0, 16, %s111_s19, [#allocation3]  }
  0x1e   : > { %s562_s29 = scalar_select %p545_p12, %s463_s11, %s47_s24  }
  0x1f   : > { %p55_p1 = scmp.eq.s32.totalorder %s467_s12, 0  ;;  %p671_p2 = scmp.eq.s32.totalorder %s508_s13, 1 }
  0x20   : > { %p309_p0 = scmp.lt.s32.totalorder %s467_s12, 2  ;;  %s121_s3 = sand.u32 1, %s463_s11  }
  0x21   : > { %p570_p9 = por %p671_p2, %p54_p13  ;;  %p56_p3 = por %p55_p1, %p54_p13 }
  0x22   : > { %s278_s4 = sshll.u32 %s121_s3, 2  ;;  %s279_s5 = sshll.u32 %s467_s12, 6 }
  0x23   : > { %s672_s30 = scalar_select %p570_p9, 1, 0 }
  0x24   : > { %s583_s8 = scalar_lea.hbm %s660_s1, %s279_s5  ;;  %s125_s14 = scalar_lea.vmem [#allocation5], %s278_s4 }
  0x25   : > { %s132_s18 = sshll.u32 %s125_s14, 4  ;;  %p585_p11 = pnand %p309_p0, %p56_p3  ;;  %s133_s18 = int_to_ptr.vmem [resolvable:$true] %s132_s18 }
  0x26   : > { %s122_s21 = scalar_lea.sflag [#allocation6], %s121_s3  ;;  %s371_s22 = scalar_lea.hbm %s583_s8, 64 }
  0x27   : > { %p372_p12 = scmp.ne.s32.totalorder %s583_s8, %s371_s22  ;;  %p373_p13 = pneg %p585_p11 }
  0x28   : > { %s376_s25 = scalar_lea.hbm %s660_s1, 128  ;;  %p377_p10 = scmp.lt.s32.totalorder %s583_s8, %s660_s1 }
  0x29   : > { %p374_p5 = pnand %p373_p13, %p372_p12  ;;  %p378_p1 = scmp.lt.s32.totalorder %s376_s25, %s371_s22 }
  0x2b   : > { %p375_p7 = pneg %p374_p5  ;;  %p379_p2 = por %p378_p1, %p377_p10 }
  0x2d   : > { %p380_p0 = pnand %p379_p2, %p375_p7 }
  0x2f   : > { %383 = shalt.err (!%p380_p0)
}
  0x30   : > { %s384_s28 = scalar_lea.vmem %s133_s18, 64  ;;  %s470_s3 = smov [#allocation5]  }
  0x31   : > { %p385_p3 = scmp.ne.s32.totalorder %s133_s18, %s384_s28  ;;  %s389_s4 = sshll.u32 %s470_s3, 4  ;;  %s390_s4 = int_to_ptr.vmem [resolvable:$false] %s389_s4 }
  0x32   : > { %s391_s5 = scalar_lea.vmem %s390_s4, 128  ;;  %p392_p12 = scmp.lt.s32.totalorder %s133_s18, %s390_s4 }
  0x33   : > { %p387_p6 = pnand %p385_p3, %p373_p13  ;;  %p393_p5 = scmp.lt.s32.totalorder %s391_s5, %s384_s28 }
  0x35   : > { %p388_p9 = pneg %p387_p6  ;;  %p394_p4 = por %p393_p5, %p392_p12 }
  0x37   : > { %p395_p8 = pnand %p394_p4, %p388_p9 }
  0x39   : > { %398 = shalt.err (!%p395_p8)
}
  0x3a   : > { %303 = dma.hbm_to_vmem [thread:$0]  (!%p585_p11), %s583_s8, 64, %s133_s18, %s122_s21  }
  0x3b   : > { %p674_p7 = scmp.ne.s32.totalorder %s668_s17, 0 }
  0x3c   : > { %p675_p10 = scmp.eq.s32.totalorder (!%p674_p7), %s508_s13, 0 }
  0x3d   : > { %141 = sbr.rel (%p674_p7) target bundleno = 96 (0x60), region = 28 }
  0x42   : > { %442 = dma.done.wait (%p675_p10), [#allocation3], 16   ;;  %p676_p6 = pmov %p675_p10 }
  0x43   : > { %s610_s6 = sand.u32 1, %s459_s10   ;;  %p677_p4 = scmp.ne.s32.totalorder %s666_s15, 0 }
  0x44   : > { %444 = vsyncadd (%p676_p6), [#allocation3], 4294967280  ;;  %s282_s7 = sshll.u32 %s610_s6, 2  ;;  %s148_s14 = scalar_lea.sflag [#allocation6], %s610_s6 }
  0x45   : > { %s151_s19 = scalar_lea.vmem [#allocation5], %s282_s7 }
  0x46   : > { %446 = dma.done.wait (%p677_p4), %s148_s14, 64  }
  0x47   : > { %448 = vsyncadd (%p677_p4), %s148_s14, 4294967232  ;;  %s171_s17 = scalar_lea.vmem [#allocation7], %s282_s7  ;;  %s285_s18 = sshll.u32 %s508_s13, 6  ;;  %v172_v0 = vld [vmem:[%s151_s19] sm:$0xf] }
  0x48   : > { %s192_s8 = sshll.u32 %s171_s17, 4  ;;  %v174_v1 = vld [vmem:[%s151_s19] sm:$0x1]  ;;  %v175_v2 = vld [vmem:[#allocation2] sm:$0x1]  ;;  %173 = vst [vmem:[%s171_s17] sm:$0xf] %v172_v0  ;;  %s190_s15 = scalar_lea.hbm %s661_s2, %s285_s18  ;;  %s619_s8 = int_to_ptr.vmem [resolvable:$true] %s192_s8 }
  0x49   : > { %v176_v3 = vmul.f32 %v175_v2, %v174_v1  ;;  %s179_s23 = scalar_lea.sflag [#allocation4], %s610_s6  ;;  %s399_s24 = scalar_lea.vmem %s619_s8, 64 }
  0x4a   : > { %p400_p8 = scmp.ne.s32.totalorder %s619_s8, %s399_s24  ;;  %p678_p9 = scmp.ne.s32.totalorder %s672_s30, 0 }
  0x4b   : > { %177 = vst [vmem:[%s171_s17] sm:$0x1] %v176_v3  ;;  %s471_s13 = smov [#allocation7]  }
  0x4c   : > { %p401_p11 = pnand %p400_p8, %p678_p9  ;;  %s403_s25 = sshll.u32 %s471_s13, 4  ;;  %s404_s25 = int_to_ptr.vmem [resolvable:$false] %s403_s25 }
  0x4d   : > { %s405_s26 = scalar_lea.vmem %s404_s25, 128  ;;  %p406_p1 = scmp.lt.s32.totalorder %s619_s8, %s404_s25 }
  0x4e   : > { %p402_p13 = pneg %p401_p11  ;;  %p407_p2 = scmp.lt.s32.totalorder %s405_s26, %s399_s24 }
  0x50   : > { %p408_p0 = por %p407_p2, %p406_p1 }
  0x52   : > { %p409_p3 = pnand %p408_p0, %p402_p13 }
  0x54   : > { %412 = shalt.err (!%p409_p3)
}
  0x55   : > { %s413_s27 = scalar_lea.hbm %s190_s15, 64  ;;  %s417_s4 = scalar_lea.hbm %s661_s2, 128 }
  0x56   : > { %p414_p12 = scmp.ne.s32.totalorder %s190_s15, %s413_s27  ;;  %p418_p10 = scmp.lt.s32.totalorder %s190_s15, %s661_s2 }
  0x57   : > { %p419_p6 = scmp.lt.s32.totalorder %s417_s4, %s413_s27 }
  0x58   : > { %p415_p5 = pnand %p414_p12, %p678_p9 }
  0x59   : > { %p420_p4 = por %p419_p6, %p418_p10 }
  0x5a   : > { %p416_p7 = pneg %p415_p5 }
  0x5c   : > { %p421_p8 = pnand %p420_p4, %p416_p7 }
  0x5e   : > { %424 = shalt.err (!%p421_p8)
}
  0x5f   : > { %294 = dma.vmem_to_hbm [thread:$0]  (%p678_p9), %s619_s8, 64, %s190_s15, %s179_s23  }
  0x60 PF: > { %s204_s7 = sand.u32 1, %s455_s9   ;;  %p679_p11 = scmp.ne.s32.totalorder %s667_s16, 0 }
  0x61   : > { %p680_p13 = scmp.ge.s32.totalorder %s467_s12, 2  ;;  %s205_s14 = scalar_lea.sflag [#allocation4], %s204_s7 }
  0x63   : > { %p305_p1 = pnand %p680_p13, %p679_p11 }
  0x65   : > { %p306_p2 = pneg %p305_p1 }
  0x67   : > { %450 = dma.done.wait (%p306_p2), %s205_s14, 64  }
  0x68   : > { %452 = vsyncadd (%p306_p2), %s205_s14, 4294967232  ;;  %p16_p0 = scmp.ge.s32.totalorder %s535_s20, 4   ;;  %s681_s9 = smov %s459_s10 }
  0x69   : > { %s682_s10 = smov %s463_s11  ;;  %s683_s11 = smov %s562_s29 }
  0x6a   : > { %s684_s12 = smov %s535_s20  ;;  %18 = sbr.rel (!%p16_p0) target bundleno = 6 (0x6), region = 78 }
  0x6f   :  { %210 = vsyncpa [#allocation3], 1 }
  0x70   :  { %212 = vsyncpa [#allocation3 + $0x1], 1 }
  0x71   :  { %213 = vsyncpa [#allocation6], 1 }
  0x72   :  { %215 = vsyncpa [#allocation6 + $0x1], 1 }
  0x73   :  { %216 = vsyncpa [#allocation4], 1 }
  0x74   :  { %218 = vsyncpa [#allocation4 + $0x1], 1 }

</bundles_post_ra>
